<compile_context>
chip_gen: v7x
topology: tpu7x:2x2x1
jax: 0.10.0
libtpu: 0.0.40
codegen_flags: <defaults>
</compile_context>

<pallas_src>
import jax
import jax.numpy as jnp
from jax.experimental import pallas as pl
from jax.experimental.pallas import tpu as pltpu


def _final_layer_kernel(x_ref, w_ref, b_ref, o_ref):
    # x_ref: (1, Cin, TS, 128) VMEM      w_ref: (Cout, Cin) SMEM (f32 scalars)
    # b_ref: (Cout,)          SMEM       o_ref: (1, Cout, TS, 128) VMEM
    cin = x_ref.shape[1]
    cout = o_ref.shape[1]

    # Load each input channel once as a dense (TS, 128) f32 slab.
    rows = [x_ref[0, ci].astype(jnp.float32) for ci in range(cin)]

    # Unrolled per-output-channel FMA chain on the VPU (Cout * Cin FMAs/voxel).
    # (For large Cin/Cout this should switch to an MXU jnp.dot path; with a
    #  4->3 channel map the MXU would be <3% utilized, so VPU is the right unit.)
    for co in range(cout):
        acc = rows[0] * w_ref[co, 0]
        for ci in range(1, cin):
            acc = acc + rows[ci] * w_ref[co, ci]
        acc = acc + b_ref[co]

        # Sigmoid with the divide kept off the VALU:
        #   exp on EUP, approx reciprocal on EUP, one Newton step -> ~f32 exact.
        # Clamp keeps exp(-acc) finite so the Newton step never sees inf.
        z = jnp.clip(acc, -30.0, 30.0)
        d = 1.0 + jnp.exp(-z)
        r = pl.reciprocal(d, approx=True)
        r = r * (2.0 - d * r)                 # Newton refinement
        o_ref[0, co] = r.astype(o_ref.dtype)


def _pick_tile_rows(num_rows, n_batch, target=512):
    """Voxel-tile height in rows of 128 lanes (~target*128 voxels per step).

    Must be a multiple of 8 (sublane rule) unless it spans the full row extent.
    Capped so that small inputs still produce >= ~4 grid blocks (keeps both
    v7x TensorCores busy and the DMA pipeline alive)."""
    if num_rows <= 8:
        return num_rows                      # full extent (allowed by BlockSpec)
    ts = min(target, num_rows)
    ts = max(8, (ts // 8) * 8)
    while n_batch * ((num_rows + ts - 1) // ts) < 4 and ts > 8:
        ts = max(8, ((ts // 2) // 8) * 8)
    return ts


def final_layer_pallas(x_ncdhw, weight, bias, *, tile_rows=512):
    """x_ncdhw: (N, Cin, D, H, W); weight: (Cout, Cin) or (Cout, Cin, 1, 1, 1);
    bias: (Cout,). Returns sigmoid(conv1x1x1(x)) with shape (N, Cout, D, H, W)."""
    N, Cin, D, H, W = x_ncdhw.shape
    Cout = weight.shape[0]
    DHW = D * H * W

    # Free reshape NCDHW -> (N, Cin, DHW); pad the voxel axis once (only when
    # DHW is not a 128-multiple) so it can be viewed as (rows, 128).
    x3 = x_ncdhw.reshape(N, Cin, DHW)
    pad = (-DHW) % 128
    if pad:
        x3 = jnp.pad(x3, ((0, 0), (0, 0), (0, pad)))
    R = (DHW + pad) // 128
    x4 = x3.reshape(N, Cin, R, 128)          # sublane- and lane-dense slabs

    w2 = weight.reshape(Cout, -1).astype(jnp.float32)   # (Cout, Cin) -> SMEM
    b1 = bias.reshape(Cout).astype(jnp.float32)         # (Cout,)     -> SMEM

    ts = _pick_tile_rows(R, N, tile_rows)
    grid = (N, pl.cdiv(R, ts))

    out4 = pl.pallas_call(
        _final_layer_kernel,
        out_shape=jax.ShapeDtypeStruct((N, Cout, R, 128), x_ncdhw.dtype),
        grid_spec=pltpu.PrefetchScalarGridSpec(
            num_scalar_prefetch=0,
            grid=grid,
            in_specs=[
                pl.BlockSpec((1, Cin, ts, 128), lambda n, i: (n, 0, i, 0)),
                pl.BlockSpec(memory_space=pltpu.MemorySpace.SMEM),   # weight
                pl.BlockSpec(memory_space=pltpu.MemorySpace.SMEM),   # bias
            ],
            out_specs=pl.BlockSpec((1, Cout, ts, 128), lambda n, i: (n, 0, i, 0)),
        ),
        compiler_params=pltpu.CompilerParams(
            dimension_semantics=("parallel", "parallel")),
    )(x4, w2, b1)

    out3 = out4.reshape(N, Cout, R * 128)
    if pad:
        out3 = out3[:, :, :DHW]
    return out3.reshape(N, Cout, D, H, W)


if __name__ == "__main__":
    key = jax.random.PRNGKey(0)
    k_x, k_w, k_b = jax.random.split(key, 3)

    # Small shapes consistent with the module: N=2, Cin=4, D=H=W=8, n_classes=3.
    N, Cin, D, H, W = 2, 4, 8, 8, 8
    n_classes = 3

    x = jax.random.normal(k_x, (N, Cin, D, H, W), dtype=jnp.float32)
    # Conv3d 1x1x1 weight is (Cout, Cin, 1, 1, 1); we use the squeezed form.
    weight = jax.random.normal(k_w, (n_classes, Cin), dtype=jnp.float32) * 0.1
    bias = jax.random.normal(k_b, (n_classes,), dtype=jnp.float32) * 0.1

    out = final_layer_pallas(x, weight, bias)
    out = jax.block_until_ready(out)

    # Reference (pure JAX) for Conv3d(1x1x1) + Sigmoid in NCDHW layout.
    ref = jax.nn.sigmoid(
        jnp.einsum("ncdhw,oc->nodhw", x, weight) + bias[None, :, None, None, None]
    )
    assert out.shape == (N, n_classes, D, H, W)
    assert jnp.allclose(out, ref, atol=1e-3, rtol=1e-3), float(
        jnp.max(jnp.abs(out - ref)))

    print("KERNEL_OK")
</pallas_src>

<mosaic_0001>
module attributes {stable_mosaic.version = 11 : i64} {
  func.func @_final_layer_kernel(%arg0: i32, %arg1: i32, %arg2: memref<1x4x4x128xf32, #tpu.memory_space<vmem>>, %arg3: memref<3x4xf32, #tpu.memory_space<smem>>, %arg4: memref<3xf32, #tpu.memory_space<smem>>, %arg5: memref<1x3x4x128xf32, #tpu.memory_space<vmem>>) attributes {dimension_semantics = [#tpu.dimension_semantics<parallel>, #tpu.dimension_semantics<parallel>], iteration_bounds = array<i64: 2, 1>, scalar_prefetch = 0 : i64, scratch_operands = 0 : i64, tpu.core_type = #tpu.core_type<tc>, window_params = [{transform_indices = @transform_0, window_bounds = array<i64: 1, 4, 4, 128>}, {transform_indices = @transform_1, window_bounds = array<i64: 3, 4>}, {transform_indices = @transform_2, window_bounds = array<i64: 3>}, {transform_indices = @transform_3, window_bounds = array<i64: 1, 3, 4, 128>}]} {
    %c0 = arith.constant 0 : index
    %c0_0 = arith.constant 0 : index
    %c0_1 = arith.constant 0 : index
    %c0_2 = arith.constant 0 : index
    %0 = vector.load %arg2[%c0, %c0_0, %c0_1, %c0_2] : memref<1x4x4x128xf32, #tpu.memory_space<vmem>>, vector<1x1x4x128xf32>
    %1 = vector.shape_cast %0 : vector<1x1x4x128xf32> to vector<4x128xf32>
    %c0_3 = arith.constant 0 : index
    %c1 = arith.constant 1 : index
    %c0_4 = arith.constant 0 : index
    %c0_5 = arith.constant 0 : index
    %2 = vector.load %arg2[%c0_3, %c1, %c0_4, %c0_5] : memref<1x4x4x128xf32, #tpu.memory_space<vmem>>, vector<1x1x4x128xf32>
    %3 = vector.shape_cast %2 : vector<1x1x4x128xf32> to vector<4x128xf32>
    %c0_6 = arith.constant 0 : index
    %c2 = arith.constant 2 : index
    %c0_7 = arith.constant 0 : index
    %c0_8 = arith.constant 0 : index
    %4 = vector.load %arg2[%c0_6, %c2, %c0_7, %c0_8] : memref<1x4x4x128xf32, #tpu.memory_space<vmem>>, vector<1x1x4x128xf32>
    %5 = vector.shape_cast %4 : vector<1x1x4x128xf32> to vector<4x128xf32>
    %c0_9 = arith.constant 0 : index
    %c3 = arith.constant 3 : index
    %c0_10 = arith.constant 0 : index
    %c0_11 = arith.constant 0 : index
    %6 = vector.load %arg2[%c0_9, %c3, %c0_10, %c0_11] : memref<1x4x4x128xf32, #tpu.memory_space<vmem>>, vector<1x1x4x128xf32>
    %7 = vector.shape_cast %6 : vector<1x1x4x128xf32> to vector<4x128xf32>
    %c0_12 = arith.constant 0 : index
    %c0_13 = arith.constant 0 : index
    %8 = memref.load %arg3[%c0_12, %c0_13] : memref<3x4xf32, #tpu.memory_space<smem>>
    %9 = vector.broadcast %8 : f32 to vector<4x128xf32>
    %10 = arith.mulf %1, %9 : vector<4x128xf32>
    %c0_14 = arith.constant 0 : index
    %c1_15 = arith.constant 1 : index
    %11 = memref.load %arg3[%c0_14, %c1_15] : memref<3x4xf32, #tpu.memory_space<smem>>
    %12 = vector.broadcast %11 : f32 to vector<4x128xf32>
    %13 = arith.mulf %3, %12 : vector<4x128xf32>
    %14 = arith.addf %10, %13 : vector<4x128xf32>
    %c0_16 = arith.constant 0 : index
    %c2_17 = arith.constant 2 : index
    %15 = memref.load %arg3[%c0_16, %c2_17] : memref<3x4xf32, #tpu.memory_space<smem>>
    %16 = vector.broadcast %15 : f32 to vector<4x128xf32>
    %17 = arith.mulf %5, %16 : vector<4x128xf32>
    %18 = arith.addf %14, %17 : vector<4x128xf32>
    %c0_18 = arith.constant 0 : index
    %c3_19 = arith.constant 3 : index
    %19 = memref.load %arg3[%c0_18, %c3_19] : memref<3x4xf32, #tpu.memory_space<smem>>
    %20 = vector.broadcast %19 : f32 to vector<4x128xf32>
    %21 = arith.mulf %7, %20 : vector<4x128xf32>
    %22 = arith.addf %18, %21 : vector<4x128xf32>
    %c0_20 = arith.constant 0 : index
    %23 = memref.load %arg4[%c0_20] : memref<3xf32, #tpu.memory_space<smem>>
    %24 = vector.broadcast %23 : f32 to vector<4x128xf32>
    %25 = arith.addf %22, %24 : vector<4x128xf32>
    %cst = arith.constant -3.000000e+01 : f32
    %cst_21 = arith.constant 3.000000e+01 : f32
    %26 = vector.broadcast %cst : f32 to vector<4x128xf32>
    %27 = arith.maximumf %26, %25 : vector<4x128xf32>
    %28 = vector.broadcast %cst_21 : f32 to vector<4x128xf32>
    %29 = arith.minimumf %28, %27 : vector<4x128xf32>
    %cst_22 = arith.constant 0.000000e+00 : f32
    %30 = vector.broadcast %cst_22 : f32 to vector<4x128xf32>
    %31 = arith.subf %30, %29 : vector<4x128xf32>
    %32 = math.exp %31 : vector<4x128xf32>
    %cst_23 = arith.constant 1.000000e+00 : f32
    %33 = vector.broadcast %cst_23 : f32 to vector<4x128xf32>
    %34 = arith.addf %33, %32 : vector<4x128xf32>
    %35 = tpu.reciprocal %34 {approx = true} : vector<4x128xf32> -> vector<4x128xf32>
    %36 = arith.mulf %34, %35 : vector<4x128xf32>
    %cst_24 = arith.constant 2.000000e+00 : f32
    %37 = vector.broadcast %cst_24 : f32 to vector<4x128xf32>
    %38 = arith.subf %37, %36 : vector<4x128xf32>
    %39 = arith.mulf %35, %38 : vector<4x128xf32>
    %c0_25 = arith.constant 0 : index
    %c0_26 = arith.constant 0 : index
    %c0_27 = arith.constant 0 : index
    %c0_28 = arith.constant 0 : index
    %40 = vector.load %arg5[%c0_25, %c0_26, %c0_27, %c0_28] : memref<1x3x4x128xf32, #tpu.memory_space<vmem>>, vector<1x1x4x128xf32>
    %41 = vector.shape_cast %40 : vector<1x1x4x128xf32> to vector<4x128xf32>
    %42 = vector.shape_cast %39 : vector<4x128xf32> to vector<1x1x4x128xf32>
    tpu.vector_store %arg5[%c0_25, %c0_26, %c0_27, %c0_28], %42 {strides = array<i32>} : memref<1x3x4x128xf32, #tpu.memory_space<vmem>>, vector<1x1x4x128xf32>,
    %c1_29 = arith.constant 1 : index
    %c0_30 = arith.constant 0 : index
    %43 = memref.load %arg3[%c1_29, %c0_30] : memref<3x4xf32, #tpu.memory_space<smem>>
    %44 = vector.broadcast %43 : f32 to vector<4x128xf32>
    %45 = arith.mulf %1, %44 : vector<4x128xf32>
    %c1_31 = arith.constant 1 : index
    %c1_32 = arith.constant 1 : index
    %46 = memref.load %arg3[%c1_31, %c1_32] : memref<3x4xf32, #tpu.memory_space<smem>>
    %47 = vector.broadcast %46 : f32 to vector<4x128xf32>
    %48 = arith.mulf %3, %47 : vector<4x128xf32>
    %49 = arith.addf %45, %48 : vector<4x128xf32>
    %c1_33 = arith.constant 1 : index
    %c2_34 = arith.constant 2 : index
    %50 = memref.load %arg3[%c1_33, %c2_34] : memref<3x4xf32, #tpu.memory_space<smem>>
    %51 = vector.broadcast %50 : f32 to vector<4x128xf32>
    %52 = arith.mulf %5, %51 : vector<4x128xf32>
    %53 = arith.addf %49, %52 : vector<4x128xf32>
    %c1_35 = arith.constant 1 : index
    %c3_36 = arith.constant 3 : index
    %54 = memref.load %arg3[%c1_35, %c3_36] : memref<3x4xf32, #tpu.memory_space<smem>>
    %55 = vector.broadcast %54 : f32 to vector<4x128xf32>
    %56 = arith.mulf %7, %55 : vector<4x128xf32>
    %57 = arith.addf %53, %56 : vector<4x128xf32>
    %c1_37 = arith.constant 1 : index
    %58 = memref.load %arg4[%c1_37] : memref<3xf32, #tpu.memory_space<smem>>
    %59 = vector.broadcast %58 : f32 to vector<4x128xf32>
    %60 = arith.addf %57, %59 : vector<4x128xf32>
    %cst_38 = arith.constant -3.000000e+01 : f32
    %cst_39 = arith.constant 3.000000e+01 : f32
    %61 = vector.broadcast %cst_38 : f32 to vector<4x128xf32>
    %62 = arith.maximumf %61, %60 : vector<4x128xf32>
    %63 = vector.broadcast %cst_39 : f32 to vector<4x128xf32>
    %64 = arith.minimumf %63, %62 : vector<4x128xf32>
    %cst_40 = arith.constant 0.000000e+00 : f32
    %65 = vector.broadcast %cst_40 : f32 to vector<4x128xf32>
    %66 = arith.subf %65, %64 : vector<4x128xf32>
    %67 = math.exp %66 : vector<4x128xf32>
    %cst_41 = arith.constant 1.000000e+00 : f32
    %68 = vector.broadcast %cst_41 : f32 to vector<4x128xf32>
    %69 = arith.addf %68, %67 : vector<4x128xf32>
    %70 = tpu.reciprocal %69 {approx = true} : vector<4x128xf32> -> vector<4x128xf32>
    %71 = arith.mulf %69, %70 : vector<4x128xf32>
    %cst_42 = arith.constant 2.000000e+00 : f32
    %72 = vector.broadcast %cst_42 : f32 to vector<4x128xf32>
    %73 = arith.subf %72, %71 : vector<4x128xf32>
    %74 = arith.mulf %70, %73 : vector<4x128xf32>
    %c0_43 = arith.constant 0 : index
    %c1_44 = arith.constant 1 : index
    %c0_45 = arith.constant 0 : index
    %c0_46 = arith.constant 0 : index
    %75 = vector.load %arg5[%c0_43, %c1_44, %c0_45, %c0_46] : memref<1x3x4x128xf32, #tpu.memory_space<vmem>>, vector<1x1x4x128xf32>
    %76 = vector.shape_cast %75 : vector<1x1x4x128xf32> to vector<4x128xf32>
    %77 = vector.shape_cast %74 : vector<4x128xf32> to vector<1x1x4x128xf32>
    tpu.vector_store %arg5[%c0_43, %c1_44, %c0_45, %c0_46], %77 {strides = array<i32>} : memref<1x3x4x128xf32, #tpu.memory_space<vmem>>, vector<1x1x4x128xf32>,
    %c2_47 = arith.constant 2 : index
    %c0_48 = arith.constant 0 : index
    %78 = memref.load %arg3[%c2_47, %c0_48] : memref<3x4xf32, #tpu.memory_space<smem>>
    %79 = vector.broadcast %78 : f32 to vector<4x128xf32>
    %80 = arith.mulf %1, %79 : vector<4x128xf32>
    %c2_49 = arith.constant 2 : index
    %c1_50 = arith.constant 1 : index
    %81 = memref.load %arg3[%c2_49, %c1_50] : memref<3x4xf32, #tpu.memory_space<smem>>
    %82 = vector.broadcast %81 : f32 to vector<4x128xf32>
    %83 = arith.mulf %3, %82 : vector<4x128xf32>
    %84 = arith.addf %80, %83 : vector<4x128xf32>
    %c2_51 = arith.constant 2 : index
    %c2_52 = arith.constant 2 : index
    %85 = memref.load %arg3[%c2_51, %c2_52] : memref<3x4xf32, #tpu.memory_space<smem>>
    %86 = vector.broadcast %85 : f32 to vector<4x128xf32>
    %87 = arith.mulf %5, %86 : vector<4x128xf32>
    %88 = arith.addf %84, %87 : vector<4x128xf32>
    %c2_53 = arith.constant 2 : index
    %c3_54 = arith.constant 3 : index
    %89 = memref.load %arg3[%c2_53, %c3_54] : memref<3x4xf32, #tpu.memory_space<smem>>
    %90 = vector.broadcast %89 : f32 to vector<4x128xf32>
    %91 = arith.mulf %7, %90 : vector<4x128xf32>
    %92 = arith.addf %88, %91 : vector<4x128xf32>
    %c2_55 = arith.constant 2 : index
    %93 = memref.load %arg4[%c2_55] : memref<3xf32, #tpu.memory_space<smem>>
    %94 = vector.broadcast %93 : f32 to vector<4x128xf32>
    %95 = arith.addf %92, %94 : vector<4x128xf32>
    %cst_56 = arith.constant -3.000000e+01 : f32
    %cst_57 = arith.constant 3.000000e+01 : f32
    %96 = vector.broadcast %cst_56 : f32 to vector<4x128xf32>
    %97 = arith.maximumf %96, %95 : vector<4x128xf32>
    %98 = vector.broadcast %cst_57 : f32 to vector<4x128xf32>
    %99 = arith.minimumf %98, %97 : vector<4x128xf32>
    %cst_58 = arith.constant 0.000000e+00 : f32
    %100 = vector.broadcast %cst_58 : f32 to vector<4x128xf32>
    %101 = arith.subf %100, %99 : vector<4x128xf32>
    %102 = math.exp %101 : vector<4x128xf32>
    %cst_59 = arith.constant 1.000000e+00 : f32
    %103 = vector.broadcast %cst_59 : f32 to vector<4x128xf32>
    %104 = arith.addf %103, %102 : vector<4x128xf32>
    %105 = tpu.reciprocal %104 {approx = true} : vector<4x128xf32> -> vector<4x128xf32>
    %106 = arith.mulf %104, %105 : vector<4x128xf32>
    %cst_60 = arith.constant 2.000000e+00 : f32
    %107 = vector.broadcast %cst_60 : f32 to vector<4x128xf32>
    %108 = arith.subf %107, %106 : vector<4x128xf32>
    %109 = arith.mulf %105, %108 : vector<4x128xf32>
    %c0_61 = arith.constant 0 : index
    %c2_62 = arith.constant 2 : index
    %c0_63 = arith.constant 0 : index
    %c0_64 = arith.constant 0 : index
    %110 = vector.load %arg5[%c0_61, %c2_62, %c0_63, %c0_64] : memref<1x3x4x128xf32, #tpu.memory_space<vmem>>, vector<1x1x4x128xf32>
    %111 = vector.shape_cast %110 : vector<1x1x4x128xf32> to vector<4x128xf32>
    %112 = vector.shape_cast %109 : vector<4x128xf32> to vector<1x1x4x128xf32>
    tpu.vector_store %arg5[%c0_61, %c2_62, %c0_63, %c0_64], %112 {strides = array<i32>} : memref<1x3x4x128xf32, #tpu.memory_space<vmem>>, vector<1x1x4x128xf32>,
    return
  }
  func.func @transform_0(%arg0: i32, %arg1: i32) -> (i32, i32, i32, i32) {
    %c0_i32 = arith.constant 0 : i32
    %c0_i32_0 = arith.constant 0 : i32
    %c0_i32_1 = arith.constant 0 : i32
    return %arg0, %c0_i32, %arg1, %c0_i32_0 : i32, i32, i32, i32
  }
  func.func @transform_1(%arg0: i32, %arg1: i32) -> (i32, i32) {
    %c0_i32 = arith.constant 0 : i32
    %c0_i32_0 = arith.constant 0 : i32
    %c0_i32_1 = arith.constant 0 : i32
    return %c0_i32, %c0_i32_0 : i32, i32
  }
  func.func @transform_2(%arg0: i32, %arg1: i32) -> i32 {
    %c0_i32 = arith.constant 0 : i32
    %c0_i32_0 = arith.constant 0 : i32
    return %c0_i32 : i32
  }
  func.func @transform_3(%arg0: i32, %arg1: i32) -> (i32, i32, i32, i32) {
    %c0_i32 = arith.constant 0 : i32
    %c0_i32_0 = arith.constant 0 : i32
    %c0_i32_1 = arith.constant 0 : i32
    return %arg0, %c0_i32, %arg1, %c0_i32_0 : i32, i32, i32, i32
  }
}

</mosaic_0001>

<bundles_post_ra>
// kernel: tpu_custom_call.1
= control target key start
LH: loop header
LB: loop body
LE: loop exit
PB: predicated region body
PF: predicated region fallthrough
CT: control target
= control target key end

     0   :  { %8 = vsyncpa [#allocation3], 0  ;;  %s997_s0 = inlined_call_operand.hbm [shape: f32[2,4,4,128], index: 0, kind: input, shape index: {}]   ;;  %s998_s1 = inlined_call_operand.hbm [shape: f32[3,4], index: 1, kind: input, shape index: {}]   ;;  %s999_s2 = inlined_call_operand.vmem [shape: f32[3], index: 2, kind: input, shape index: {}]   ;;  %s1000_s3 = inlined_call_operand.hbm [shape: f32[2,3,4,128], index: 3, kind: output, shape index: {}]  }
   0x1   :  { %10 = vsyncpa [#allocation3 + $0x1], 0 }
   0x2   :  { %11 = vsyncpa [#allocation5], 0 }
   0x3   :  { %12 = vsyncpa [#allocation6], 0 }
   0x4   :  { %13 = vsyncpa [#allocation4], 0 }
   0x5   :  { %15 = vsyncpa [#allocation4 + $0x1], 0  ;;  %s768_s12 = smov 0   ;;  %s770_s13 = smov 0  }
   0x6   :  { %s772_s14 = smov 0   ;;  %s774_s15 = smov 0  }
   0x7   :  { %s776_s16 = smov 0   ;;  %s778_s17 = smov 0  }
   0x8 LB: > { %s451_s18 = sadd.s32 4294967295, %s738_s17   ;;  %s452_s19 = sadd.s32 4294967294, %s738_s17   ;;  %s738_s17 = sphi %s778_s17, %s21_s17   ;;  %s734_s16 = sphi %s776_s16, %s1021_s16   ;;  %s730_s15 = sphi %s774_s15, %s1020_s15   ;;  %s726_s14 = sphi %s772_s14, %s1019_s14   ;;  %s722_s13 = sphi %s770_s13, %s1018_s13   ;;  %s718_s12 = sphi %s768_s12, %s1017_s12  }
   0x9   : > { %s42_s20 = sadd.s32 1, %s726_s14  ;;  %p49_p0 = scmp.ne.s32.totalorder %s726_s14, %s722_s13 }
   0xa   : > { %p50_p1 = scmp.eq.s32.totalorder %s738_s17, 0  ;;  %p55_p2 = scmp.ne.s32.totalorder %s722_s13, %s718_s12 }
   0xb   : > { %p806_p3 = scmp.eq.s32.totalorder %s451_s18, 0  ;;  %p123_p4 = scmp.eq.s32.totalorder %s451_s18, 1 }
   0xc   : > { %p51_p5 = por %p50_p1, %p49_p0  ;;  %p129_p6 = scmp.eq.s32.totalorder %s452_s19, 1 }
   0xd   : > { %s1005_s21 = scalar_select %p806_p3, 1, 0 }
   0xe   : > { %p812_p7 = por %p806_p3, %p55_p2  ;;  %p816_p8 = por %p123_p4, %p49_p0 }
   0xf   : > { %p820_p9 = por %p129_p6, %p55_p2  ;;  %p453_p10 = scmp.ge.s32.totalorder %s738_s17, 1 }
  0x10   : > { %s1006_s22 = scalar_select %p812_p7, 1, 0 }
  0x11   : > { %s1007_s23 = scalar_select %p816_p8, 1, 0 }
  0x12   : > { %s1008_s24 = scalar_select %p820_p9, 1, 0 }
  0x13   : > { %p136_p11 = scmp.lt.s32.totalorder %s738_s17, 3  ;;  %p520_p1 = scmp.lt.s32.totalorder %s738_s17, 2 }
  0x14   : > { %s158_s28 = sshll.u32 %s999_s2, 4  ;;  %s169_s4 = sand.u32 1, %s726_s14   ;;  %s159_s28 = int_to_ptr.vmem [resolvable:$true] %s158_s28 }
  0x15   : > { %p827_p13 = pnand %p453_p10, %p136_p11  ;;  %p837_p4 = pnand %p520_p1, %p51_p5 }
  0x16   : > { %s33_s5 = sadd.s32 1, %s734_s16  ;;  %s590_s8 = scalar_lea.hbm %s998_s1, 64 }
  0x17   : > { %p503_p0 = pneg %p827_p13  ;;  %p591_p5 = scmp.ne.s32.totalorder %s998_s1, %s590_s8 }
  0x18   : > { %p597_p1 = scmp.lt.u32.totalorder %s590_s8, %s998_s1 }
  0x19   : > { %p843_p2 = pnand %p503_p0, %p806_p3 }
  0x1b   : > { %p592_p6 = pneg %p843_p2 }
  0x1d   : > { %p593_p10 = pnand %p592_p6, %p591_p5 }
  0x1f   : > { %p594_p11 = pneg %p593_p10 }
  0x21   : > { %p599_p0 = pnand %p597_p1, %p594_p11 }
  0x23   : > { %602 = shalt.err (!%p599_p0)
}
  0x24   : > { %s740_s19 = smov [#allocation7]   ;;  %s603_s6 = scalar_lea.vmem %s159_s28, 16 }
  0x25   : > { %506 = dma.hbm_to_smem (!%p843_p2), %s998_s1, 64, %s740_s19, [#allocation5]  }
  0x26   : > { %p604_p12 = scmp.ne.s32.totalorder %s159_s28, %s603_s6  ;;  %p611_p3 = scmp.lt.s32.totalorder %s159_s28, %s159_s28 }
  0x27   : > { %p612_p5 = scmp.lt.s32.totalorder %s603_s6, %s603_s6 }
  0x28   : > { %p606_p9 = pnand %p604_p12, %p592_p6 }
  0x29   : > { %p613_p10 = por %p612_p5, %p611_p3 }
  0x2a   : > { %p607_p8 = pneg %p606_p9 }
  0x2c   : > { %p614_p7 = pnand %p613_p10, %p607_p8 }
  0x2e   : > { %617 = shalt.err (!%p614_p7)
}
  0x2f   : > { %s741_s7 = smov [#allocation8]   ;;  %p35_p11 = scmp.ge.s32.totalorder %s33_s5, 2 }
  0x30   : > { %509 = dma.vmem_to_smem (!%p843_p2), %s159_s28, 16, %s741_s7, [#allocation6]  }
  0x31   : > { %s457_s8 = sshll.u32 %s169_s4, 4  ;;  %s488_s9 = sshll.u32 %s734_s16, 8 }
  0x32   : > { %s1023_s5 = smov (%p35_p11, %s33_s5), 0  ;;  %s875_s30 = scalar_lea.hbm %s997_s0, %s488_s9 }
  0x33   : > { %s37_s18 = ssub.s32 %s734_s16, %s1023_s5  ;;  %s173_s19 = scalar_lea.vmem [#allocation2], %s457_s8 }
  0x34   : > { %s181_s28 = sshll.u32 %s173_s19, 4  ;;  %p40_p3 = scmp.eq.s32.totalorder %s37_s18, 0  ;;  %s879_s28 = int_to_ptr.vmem [resolvable:$true] %s181_s28 }
  0x35   : > { %s888_s27 = scalar_lea.sflag [#allocation3], %s169_s4  ;;  %s618_s6 = scalar_lea.hbm %s875_s30, 256 }
  0x36   : > { %s884_s26 = scalar_select %p40_p3, %s726_s14, %s42_s20  }
  0x37   : > { %p619_p7 = scmp.ne.s32.totalorder %s875_s30, %s618_s6  ;;  %p620_p8 = pneg %p837_p4 }
  0x38   : > { %s623_s9 = scalar_lea.hbm %s997_s0, 512  ;;  %p624_p2 = scmp.lt.u32.totalorder %s875_s30, %s997_s0 }
  0x39   : > { %p621_p9 = pnand %p620_p8, %p619_p7  ;;  %p625_p6 = scmp.lt.u32.totalorder %s623_s9, %s618_s6 }
  0x3a   : > { %p627_p0 = scmp.lt.u32.totalorder %s618_s6, %s875_s30 }
  0x3b   : > { %p622_p12 = pneg %p621_p9  ;;  %p626_p1 = por %p625_p6, %p624_p2 }
  0x3d   : > { %p628_p5 = por %p627_p0, %p626_p1 }
  0x3f   : > { %p629_p10 = pnand %p628_p5, %p622_p12 }
  0x41   : > { %632 = shalt.err (!%p629_p10)
}
  0x42   : > { %s633_s20 = scalar_lea.vmem %s879_s28, 256  ;;  %s742_s4 = smov [#allocation2]  }
  0x43   : > { %p634_p11 = scmp.ne.s32.totalorder %s879_s28, %s633_s20  ;;  %s638_s18 = sshll.u32 %s742_s4, 4  ;;  %s639_s18 = int_to_ptr.vmem [resolvable:$false] %s638_s18 }
  0x44   : > { %s640_s19 = scalar_lea.vmem %s639_s18, 512  ;;  %p641_p9 = scmp.lt.s32.totalorder %s879_s28, %s639_s18 }
  0x45   : > { %p636_p3 = pnand %p634_p11, %p620_p8  ;;  %p642_p2 = scmp.lt.s32.totalorder %s640_s19, %s633_s20 }
  0x47   : > { %p637_p7 = pneg %p636_p3  ;;  %p643_p6 = por %p642_p2, %p641_p9 }
  0x49   : > { %p644_p1 = pnand %p643_p6, %p637_p7 }
  0x4b   : > { %647 = shalt.err (!%p644_p1)
}
  0x4c   : > { %s743_s6 = smov 64   ;;  %s744_s7 = smov 4  }
  0x4d   : > { %513 = dma.hbm_to_vmem [thread:$0]  (!%p837_p4), %s875_s30, 256, %s879_s28, %s888_s27, %s743_s6, %s743_s6, %s744_s7  }
  0x4e   : > { %193 = sbr.rel (%p827_p13) target bundleno = 166 (0xa6), region = 32  ;;  %s919_s8 = sand.u32 (!%p827_p13), 1, %s722_s13  }
  0x4f   : > { %s461_s9 = sshll.u32 (!%p827_p13), %s919_s8, 4  ;;  %s196_s10 = scalar_lea.sflag (!%p827_p13), [#allocation3], %s919_s8 }
  0x50   : > { %s199_s11 = scalar_lea.vmem (!%p827_p13), [#allocation2], %s461_s9  ;;  %p1012_p8 = scmp.ne.s32.totalorder (!%p827_p13), %s1006_s22, 0 }
  0x55   : > { %701 = dma.done.wait (%p1012_p8), %s196_s10, 256  }
  0x56   : > { %703 = vsyncadd (%p1012_p8), %s196_s10, 4294967040  ;;  %p1013_p12 = scmp.ne.s32.totalorder %s1005_s21, 0 }
  0x58   : > { %705 = dma.done.wait (%p1013_p12), [#allocation5], 64  }
  0x59   : > { %707 = vsyncadd (%p1013_p12), [#allocation5], 4294967232 }
  0x5a   : > { %709 = dma.done.wait (%p1013_p12), [#allocation6], 16  }
  0x5b   : > { %711 = vsyncadd (%p1013_p12), [#allocation6], 4294967280 }
  0x5c   : > { %212 = sfence }
  0x5d   : > { %s238_s25 = sld [smem:[#allocation7]]  ;;  %s467_s29 = sld [smem:[#allocation7 + $0x1]]  ;;  %v231_v0 = vld [vmem:[%s199_s11] sm:$0xf]  ;;  %v464_v1 = vld [vmem:[%s199_s11 + $0x4] sm:$0xf] }
  0x5e   : > { %s468_s30 = sld [smem:[#allocation7 + $0x2]]  ;;  %s469_s28 = sld [smem:[#allocation7 + $0x3]]  ;;  %v465_v2 = vld [vmem:[%s199_s11 + $0x8] sm:$0xf]  ;;  %v466_v4 = vld [vmem:[%s199_s11 + $0xc] sm:$0xf] }
  0x5f   : > { %s935_s22 = sld [smem:[#allocation8]]  ;;  %s472_s20 = sld [smem:[#allocation7 + $0x81]] }
  0x60   : > { %s471_s27 = sld [smem:[#allocation7 + $0x80]]  ;;  %s473_s4 = sld [smem:[#allocation7 + $0x82]] }
  0x61   : > { %s474_s18 = sld [smem:[#allocation7 + $0x83]]  ;;  %s478_s21 = sld [smem:[#allocation7 + $0x100]] }
  0x62   : > { %s479_s19 = sld [smem:[#allocation7 + $0x101]]  ;;  %s480_s6 = sld [smem:[#allocation7 + $0x102]] }
  0x63   : > { %v239_v3 = vstv %s238_s25  ;;  %v242_v6 = vstv %s467_s29  ;;  %s481_s7 = sld [smem:[#allocation7 + $0x103]]  ;;  %s937_s9 = sld [smem:[#allocation8 + $0x1]] }
  0x64   : > { %v240_v5 = vmul.f32 %v239_v3, %v231_v0  ;;  %v243_v7 = vmul.f32 %v464_v1, %v242_v6  ;;  %v246_v8 = vstv %s468_s30  ;;  %v250_v9 = vstv %s469_s28  ;;  %s482_s10 = sld [smem:[#allocation8 + $0x2]]  ;;  %s489_s11 = smul.u32 12, %s919_s8 }
  0x65   : > { %v247_v10 = vmul.f32 %v465_v2, %v246_v8  ;;  %v251_v12 = vmul.f32 %v466_v4, %v250_v9  ;;  %v271_v15 = vstv %s472_s20  ;;  %v254_v21 = vstv %s935_s22  ;;  %s490_s30 = smul.u32 192, %s730_s15  ;;  %s328_s20 = scalar_lea.sflag [#allocation4], %s919_s8 }
  0x66   : > { %v244_v11 = vadd.f32 %v243_v7, %v240_v5  ;;  %v268_v13 = vstv %s471_s27  ;;  %v275_v16 = vstv %s473_s4  ;;  %v272_v18 = vmul.f32 %v464_v1, %v271_v15  ;;  %s230_s25 = scalar_lea.vmem [#allocation9], %s489_s11  ;;  %p1014_p4 = scmp.ne.s32.totalorder %s1007_s23, 0 }
  0x67   : > { %v269_v14 = vmul.f32 %v268_v13, %v231_v0  ;;  %v276_v19 = vmul.f32 %v465_v2, %v275_v16  ;;  %v279_v20 = vstv %s474_s18  ;;  %v298_v23 = vstv %s478_s21  ;;  %s342_s29 = sshll.u32 %s230_s25, 4  ;;  %s948_s27 = scalar_lea.hbm %s1000_s3, %s490_s30  ;;  %s943_s29 = int_to_ptr.vmem [resolvable:$true] %s342_s29 }
  0x68   : > { %v248_v17 = vadd.f32 %v247_v10, %v244_v11  ;;  %v280_v22 = vmul.f32 %v466_v4, %v279_v20  ;;  %v301_v24 = vstv %s479_s19  ;;  %v299_v27 = vmul.f32 %v298_v23, %v231_v0  ;;  %s648_s4 = scalar_lea.vmem %s943_s29, 192  ;;  %s745_s15 = smov [#allocation9]  }
  0x69   : > { %v273_v26 = vadd.f32 %v272_v18, %v269_v14  ;;  %v302_v28 = vmul.f32 %v464_v1, %v301_v24  ;;  %v305_v29 = vstv %s480_s6  ;;  %v309_v30 = vstv %s481_s7  ;;  %p649_p13 = scmp.ne.s32.totalorder %s943_s29, %s648_s4  ;;  %s652_s18 = sshll.u32 %s745_s15, 4  ;;  %s653_s18 = int_to_ptr.vmem [resolvable:$false] %s652_s18 }
  0x6a   : > { %v252_v25 = vadd.f32 %v251_v12, %v248_v17  ;;  %v306_v34 = vmul.f32 %v465_v2, %v305_v29  ;;  %v283_v35 = vstv %s937_s9  ;;  %v310_v36 = vmul.f32 %v466_v4, %v309_v30  ;;  %s654_s21 = scalar_lea.vmem %s653_s18, 384  ;;  %p655_p10 = scmp.lt.s32.totalorder %s943_s29, %s653_s18 }
  0x6b   : > { %v277_v32 = vadd.f32 %v276_v19, %v273_v26  ;;  %v303_v33 = vadd.f32 %v302_v28, %v299_v27  ;;  %v313_v40 = vstv %s482_s10  ;;  %p650_p0 = pnand %p649_p13, %p1014_p4  ;;  %p656_p11 = scmp.lt.s32.totalorder %s654_s21, %s648_s4 }
  0x6c   : > { %v255_v31 = vadd.f32 %v254_v21, %v252_v25 }
  0x6d   : > { %v281_v38 = vadd.f32 %v280_v22, %v277_v32  ;;  %v307_v39 = vadd.f32 %v306_v34, %v303_v33  ;;  %p651_p5 = pneg %p650_p0  ;;  %p657_p3 = por %p656_p11, %p655_p10 }
  0x6e   : > { %v470_v37 = vclamps-f32 %v255_v31, 30.0 }
  0x6f   : > { %v284_v42 = vadd.f32 %v283_v35, %v281_v38  ;;  %v311_v43 = vadd.f32 %v310_v36, %v307_v39  ;;  %p658_p7 = pnand %p657_p3, %p651_p5 }
  0x70   : > { %v258_v41 = vsub.f32 0.0, %v470_v37 }
  0x71   : > { %v476_v45 = vclamps-f32 %v284_v42, 30.0  ;;  %v314_v46 = vadd.f32 %v313_v40, %v311_v43 }
  0x72   : > { %v259_v44 = vmul.f32 1.442695, %v258_v41 }
  0x73   : > { %v287_v47 = vsub.f32 0.0, %v476_v45  ;;  %v483_v48 = vclamps-f32 %v314_v46, 30.0 }
  0x74   : > { %578 = vpow2.f32 %v259_v44 }
  0x75   : > { %v288_v49 = vmul.f32 1.442695, %v287_v47  ;;  %v317_v50 = vsub.f32 0.0, %v483_v48 }
  0x77   : > { %580 = vpow2.f32 %v288_v49  ;;  %v318_v51 = vmul.f32 1.442695, %v317_v50 }
  0x79   : > { %582 = vpow2.f32 %v318_v51 }
  0x7e   : > { %v579_v52 = vpop.eup %578 }
  0x7f   : > { %v261_v53 = vadd.f32 1.0, %v579_v52 }
  0x81   : > { %584 = vrcp.f32 %v261_v53  ;;  %v581_v54 = vpop.eup %580 }
  0x82   : > { %v290_v55 = vadd.f32 1.0, %v581_v54 }
  0x83   : > { %v583_v56 = vpop.eup %582 }
  0x84   : > { %586 = vrcp.f32 %v290_v55  ;;  %v320_v57 = vadd.f32 1.0, %v583_v56 }
  0x86   : > { %588 = vrcp.f32 %v320_v57 }
  0x8b   : > { %v585_v58 = vpop.eup %584 }
  0x8c   : > { %v263_v59 = vmul.f32 %v585_v58, %v261_v53 }
  0x8e   : > { %v264_v60 = vsub.f32 2.0, %v263_v59  ;;  %v587_v61 = vpop.eup %586 }
  0x8f   : > { %v292_v63 = vmul.f32 %v587_v61, %v290_v55 }
  0x90   : > { %v265_v62 = vmul.f32 %v585_v58, %v264_v60  ;;  %v589_v0 = vpop.eup %588 }
  0x91   : > { %v293_v1 = vsub.f32 2.0, %v292_v63  ;;  %v322_v2 = vmul.f32 %v589_v0, %v320_v57 }
  0x92   : > { %266 = vst [vmem:[%s230_s25] sm:$0xf] %v265_v62 }
  0x93   : > { %v294_v3 = vmul.f32 %v587_v61, %v293_v1  ;;  %v323_v4 = vsub.f32 2.0, %v322_v2 }
  0x95   : > { %477 = vst [vmem:[%s230_s25 + $0x4] sm:$0xf] %v294_v3  ;;  %v324_v5 = vmul.f32 %v589_v0, %v323_v4 }
  0x97   : > { %484 = vst [vmem:[%s230_s25 + $0x8] sm:$0xf] %v324_v5 }
  0x98   : > { %661 = shalt.err (!%p658_p7)
}
  0x99   : > { %s662_s19 = scalar_lea.hbm %s948_s27, 192  ;;  %s666_s9 = scalar_lea.hbm %s1000_s3, 384 }
  0x9a   : > { %p663_p9 = scmp.ne.s32.totalorder %s948_s27, %s662_s19  ;;  %p667_p1 = scmp.lt.u32.totalorder %s948_s27, %s1000_s3 }
  0x9b   : > { %p668_p8 = scmp.lt.u32.totalorder %s666_s9, %s662_s19  ;;  %p670_p13 = scmp.lt.u32.totalorder %s662_s19, %s948_s27 }
  0x9c   : > { %p664_p2 = pnand %p663_p9, %p1014_p4 }
  0x9d   : > { %p669_p12 = por %p668_p8, %p667_p1 }
  0x9e   : > { %p665_p6 = pneg %p664_p2 }
  0x9f   : > { %p671_p0 = por %p670_p13, %p669_p12 }
  0xa1   : > { %p672_p5 = pnand %p671_p0, %p665_p6 }
  0xa3   : > { %675 = shalt.err (!%p672_p5)
}
  0xa4   : > { %s746_s25 = smov 64   ;;  %s747_s30 = smov 4  }
  0xa5   : > { %501 = dma.vmem_to_hbm [thread:$0]  (%p1014_p4), %s943_s29, 192, %s948_s27, %s328_s20, %s746_s25, %s746_s25, %s747_s30  }
  0xa6 PF: > { %s357_s28 = sand.u32 1, %s718_s12   ;;  %p1015_p10 = scmp.ne.s32.totalorder %s1008_s24, 0 }
  0xa7   : > { %p1016_p11 = scmp.ge.s32.totalorder %s738_s17, 2  ;;  %s358_s22 = scalar_lea.sflag [#allocation4], %s357_s28 }
  0xa9   : > { %p515_p3 = pnand %p1016_p11, %p1015_p10 }
  0xab   : > { %713 = dma.done.wait (!%p515_p3), %s358_s22, 192  }
  0xac   : > { %715 = vsyncadd (!%p515_p3), %s358_s22, 4294967104  ;;  %s21_s17 = sadd.s32 1, %s738_s17   ;;  %s1017_s12 = smov %s722_s13 }
  0xad   : > { %p18_p7 = scmp.ge.s32.totalorder %s21_s17, 4   ;;  %s1018_s13 = smov %s726_s14 }
  0xae   : > { %s1019_s14 = smov %s884_s26  ;;  %s1020_s15 = smov %s734_s16 }
  0xaf   : > { %s1021_s16 = smov %s1023_s5  ;;  %20 = sbr.rel (!%p18_p7) target bundleno = 8 (0x8), region = 92 }
  0xb6   :  { %363 = vsyncpa [#allocation3], 1 }
  0xb7   :  { %365 = vsyncpa [#allocation3 + $0x1], 1 }
  0xb8   :  { %366 = vsyncpa [#allocation4], 1 }
  0xb9   :  { %368 = vsyncpa [#allocation4 + $0x1], 1 }
  0xba   :  { %369 = vsyncpa [#allocation5], 1 }
  0xbb   :  { %371 = vsyncpa [#allocation5 + $0x1], 1 }
  0xbc   :  { %372 = vsyncpa [#allocation6], 1 }
  0xbd   :  { %374 = vsyncpa [#allocation6 + $0x1], 1 }

</bundles_post_ra>
